<compile_context>
chip_gen: v7x
topology: tpu7x:2x2x1
jax: 0.10.0
libtpu: 0.0.40
codegen_flags: <defaults>
</compile_context>

<pallas_src>
import jax
import jax.numpy as jnp
from jax.experimental import pallas as pl
from jax.experimental.pallas import tpu as pltpu


_LANE = 128
_SUBLANE = 8
_MiB = 1024 * 1024
_TARGET_X_TILE_BYTES = 4 * _MiB   # byte-targeted streaming tile (2-6 MiB sweet spot)
_MIN_GRID_STEPS = 4               # give v7x's two TensorCores >= 2 steps each when possible


def _vmem_budget_and_limit():
    """Generation-aware VMEM sizing.

    128-MiB parts (v5e/v6e): 48 MiB streaming budget, 64 MiB scoped limit.
    v7x (64 MiB physical) or unknown: 24 MiB budget, 32 MiB limit.
    """
    try:
        cap = pltpu.get_tpu_info().vmem_capacity_bytes
    except Exception:
        cap = None
    if cap is not None and cap >= 96 * _MiB:
        return 48 * _MiB, 64 * _MiB
    return 24 * _MiB, 32 * _MiB


def _perm1d_matmul_kernel(w_ref, x_ref, y_ref):
    # w_ref: (tCo, C) or (C, C); x_ref: (C, tT); y_ref: (tCo or C, tT).
    # One MXU matmul per grid step; f32 accumulation.  Default MXU precision (multi-pass
    # bf16 for f32 inputs) -> ~1e-4 abs error vs a HIGHEST-precision reference.
    y = jnp.dot(w_ref[...], x_ref[...], preferred_element_type=jnp.float32)
    y_ref[...] = y.astype(y_ref.dtype)


def _choose_tile_co(C, itemsize, budget):
    """Tile output channels only when W's double buffer would eat > half the budget."""
    if 2 * C * C * itemsize <= budget // 2:
        return None
    # Bound W's double-buffered (tCo, C) tile to <= budget/4.
    tco = ((budget // 4) // (2 * C * itemsize)) // _SUBLANE * _SUBLANE
    tco = int(max(min(tco, C), _SUBLANE))
    return None if tco >= C else tco


def _choose_tile_t(B, C, T, itemsize, budget, n_co_tiles, tile_co):
    """Largest useful lane-dense time tile.

    Sized from a byte target (~4 MiB x tile) and the VMEM budget (accounting for the
    double-buffered x, y and W tiles), then (i) shrunk so the grid has >= _MIN_GRID_STEPS
    parallel steps for the v7x 2-TC split when T allows, and (ii) snapped to a nearby
    128-multiple divisor of T to avoid masked partial-lane stores on the last tile.
    """
    row_bytes = C * itemsize
    w_rows = C if tile_co is None else tile_co   # y tile and W tile share this row count
    # Live VMEM: 2x x-tile + 2x y-tile + 2x W-tile (all double-buffered by default).
    avail = max(budget - 2 * w_rows * C * itemsize,
                2 * (C + w_rows) * itemsize * _LANE)
    max_tt_vmem = avail // (2 * (C + w_rows) * itemsize)
    target_tt = max(_TARGET_X_TILE_BYTES // row_bytes, _LANE)
    tT = int(min(T, max_tt_vmem, target_tt))

    if tT < T:
        tT = max((tT // _LANE) * _LANE, _LANE)   # partial-width tiles must keep last dim % 128 == 0

    # Ensure enough grid steps so both v7x TensorCores stream (cheap on 1-TC chips).
    n_t = -(-T // tT)
    if B * n_t * n_co_tiles < _MIN_GRID_STEPS:
        needed_t = -(-_MIN_GRID_STEPS // (B * n_co_tiles))
        cand = ((T // needed_t) // _LANE) * _LANE
        if cand >= _LANE:
            tT = min(tT, cand)

    # Snap to a 128-multiple divisor of T nearby (removes the ragged final tile).
    if 0 < tT < T and T % tT != 0:
        lo = max(tT // 2, _LANE)
        for cand in range(tT - _LANE, lo - 1, -_LANE):
            if cand > 0 and T % cand == 0:
                tT = cand
                break
    return tT


def _forward_tiled(x, W, tT, tCo, vmem_limit):
    B, C, T = x.shape
    n_t = pl.cdiv(T, tT)
    itemsize = jnp.dtype(x.dtype).itemsize
    cost = pl.CostEstimate(
        flops=2 * B * C * C * T,
        transcendentals=0,
        bytes_accessed=2 * B * C * T * itemsize + C * C * itemsize,
    )

    if tCo is None:
        grid = (B, n_t)
        in_specs = [
            pl.BlockSpec((C, C), lambda b, t: (0, 0)),            # W: constant block index -> resident
            pl.BlockSpec((None, C, tT), lambda b, t: (b, 0, t)),  # x[b] time tile
        ]
        out_specs = pl.BlockSpec((None, C, tT), lambda b, t: (b, 0, t))
        semantics = ("parallel", "parallel")
    else:
        n_co = pl.cdiv(C, tCo)
        # co innermost: the x tile's block index is constant across it, so it is not re-fetched;
        # only the (tCo, C) W slab streams per inner step.
        grid = (B, n_t, n_co)
        in_specs = [
            pl.BlockSpec((tCo, C), lambda b, t, co: (co, 0)),
            pl.BlockSpec((None, C, tT), lambda b, t, co: (b, 0, t)),
        ]
        out_specs = pl.BlockSpec((None, tCo, tT), lambda b, t, co: (b, co, t))
        semantics = ("parallel", "parallel", "parallel")

    return pl.pallas_call(
        _perm1d_matmul_kernel,
        out_shape=jax.ShapeDtypeStruct((B, C, T), x.dtype),
        grid_spec=pltpu.PrefetchScalarGridSpec(
            num_scalar_prefetch=0,
            grid=grid,
            in_specs=in_specs,
            out_specs=out_specs,
        ),
        compiler_params=pltpu.CompilerParams(
            # TODO(synk): verify on a v7x profile that "parallel" semantics actually shard these
            # grid axes across both TensorCores; if not, switch to pltpu.CORE_PARALLEL there.
            dimension_semantics=semantics,
            vmem_limit_bytes=vmem_limit,
        ),
        cost_estimate=cost,
    )(W, x)


def permutation1d_forward(x, W, tile_t=None, tile_co=None):
    """Permutation1d.forward: y = conv1d(x, W[:, :, None]), dlog_det = T * slogdet(W)[1].

    x: (B, C, T), W: (C, C)  ->  (y: (B, C, T), dlog_det scalar float32).
    tile_t: optional time-tile override (must be a multiple of 128, or >= T).
    tile_co: optional output-channel-tile override (must be a multiple of 8, or >= C).
    bf16 x/W is also supported (halves streamed bytes; accumulation stays f32).
    """
    B, C, T = x.shape
    itemsize = jnp.dtype(x.dtype).itemsize
    budget, vmem_limit = _vmem_budget_and_limit()

    if tile_co is None:
        tile_co = _choose_tile_co(C, itemsize, budget)
    elif tile_co >= C:
        tile_co = None
    elif tile_co <= 0 or tile_co % _SUBLANE != 0:
        raise ValueError(f"tile_co must be a positive multiple of {_SUBLANE} or >= C; got {tile_co}")
    n_co_tiles = 1 if tile_co is None else pl.cdiv(C, tile_co)

    if tile_t is None:
        tile_t = _choose_tile_t(B, C, T, itemsize, budget, n_co_tiles, tile_co)
    elif tile_t >= T:
        tile_t = T
    elif tile_t <= 0 or tile_t % _LANE != 0:
        raise ValueError(f"tile_t must be a positive multiple of {_LANE} or >= T; got {tile_t}")

    y = _forward_tiled(x, W, tile_t, tile_co, vmem_limit)

    # Scalar glue on a tiny (C, C) matrix; matches the PyTorch module (time * log|det W|,
    # deliberately no batch factor, as in the reference forward()).
    dlog_det = T * jnp.linalg.slogdet(W.astype(jnp.float32))[1]
    return y, dlog_det


def init_permutation_weight(key, c):
    """Matches the PyTorch __init__: QR of a normal matrix, first column flipped if det < 0."""
    A = jax.random.normal(key, (c, c), dtype=jnp.float32)
    Q, _ = jnp.linalg.qr(A)
    det = jnp.linalg.det(Q)
    Q = Q.at[:, 0].set(jnp.where(det < 0, -Q[:, 0], Q[:, 0]))
    return Q


if __name__ == "__main__":
    key = jax.random.PRNGKey(0)
    k_w, k_x, k_w2, k_x2, k_w3, k_x3, k_w4, k_x4 = jax.random.split(key, 8)
    HI = jax.lax.Precision.HIGHEST

    # --- 1. Tiny shapes: tT == T, grid (B, 1) (no host-side transposes any more) ---
    B, C, T = 2, 4, 16
    W = init_permutation_weight(k_w, C)
    x = jax.random.normal(k_x, (B, C, T), dtype=jnp.float32)
    y, dlog_det = permutation1d_forward(x, W)
    jax.block_until_ready((y, dlog_det))
    assert jnp.allclose(y, jnp.einsum("ij,bjt->bit", W, x), atol=1e-5), "tiny-path output mismatch"
    assert jnp.allclose(dlog_det, T * jnp.linalg.slogdet(W)[1], atol=1e-5), "log-det mismatch"

    # --- 2. Explicit tile_t with a partial last tile (masked-store path still correct) ---
    B2, C2, T2 = 2, 8, 640
    W2 = init_permutation_weight(k_w2, C2)
    x2 = jax.random.normal(k_x2, (B2, C2, T2), dtype=jnp.float32)
    y2, dlog2 = permutation1d_forward(x2, W2, tile_t=256)   # grid = (2, 3), last tile partial
    jax.block_until_ready((y2, dlog2))
    assert jnp.allclose(y2, jnp.einsum("ij,bjt->bit", W2, x2, precision=HI), atol=1e-4), \
        "explicit-tile output mismatch"
    assert jnp.allclose(dlog2, T2 * jnp.linalg.slogdet(W2)[1], atol=1e-4), "tiled log-det mismatch"

    # --- 3. Auto path: byte-targeted tT + min-grid-steps split (expect grid (2, 2)) ---
    B3, C3, T3 = 2, 8, 4096
    W3 = init_permutation_weight(k_w3, C3)
    x3 = jax.random.normal(k_x3, (B3, C3, T3), dtype=jnp.float32)
    y3, _ = permutation1d_forward(x3, W3)
    jax.block_until_ready(y3)
    assert jnp.allclose(y3, jnp.einsum("ij,bjt->bit", W3, x3, precision=HI), atol=1e-4), \
        "auto-tile output mismatch"

    # --- 4. Output-channel-tiled path (exercises the large-C structure at small shapes) ---
    B4, C4, T4 = 2, 16, 256
    W4 = init_permutation_weight(k_w4, C4)
    x4 = jax.random.normal(k_x4, (B4, C4, T4), dtype=jnp.float32)
    y4, _ = permutation1d_forward(x4, W4, tile_t=128, tile_co=8)   # grid = (2, 2, 2)
    jax.block_until_ready(y4)
    assert jnp.allclose(y4, jnp.einsum("ij,bjt->bit", W4, x4, precision=HI), atol=1e-4), \
        "channel-tiled output mismatch"

    print("KERNEL_OK")
</pallas_src>

<mosaic_0001>
module attributes {stable_mosaic.version = 11 : i64} {
  func.func @_perm1d_matmul_kernel(%arg0: i32, %arg1: i32, %arg2: memref<4x4xf32, #tpu.memory_space<vmem>>, %arg3: memref<1x4x16xf32, #tpu.memory_space<vmem>>, %arg4: memref<1x4x16xf32, #tpu.memory_space<vmem>>) attributes {dimension_semantics = [#tpu.dimension_semantics<parallel>, #tpu.dimension_semantics<parallel>], iteration_bounds = array<i64: 2, 1>, scalar_prefetch = 0 : i64, scratch_operands = 0 : i64, tpu.core_type = #tpu.core_type<tc>, window_params = [{pipeline_mode = #tpu.pipeline_mode<synchronous>, transform_indices = @transform_0, window_bounds = array<i64: 4, 4>}, {transform_indices = @transform_1, window_bounds = array<i64: 1, 4, 16>}, {transform_indices = @transform_2, window_bounds = array<i64: 1, 4, 16>}]} {
    %c0 = arith.constant 0 : index
    %c0_0 = arith.constant 0 : index
    %0 = vector.load %arg2[%c0, %c0_0] : memref<4x4xf32, #tpu.memory_space<vmem>>, vector<4x4xf32>
    %c0_1 = arith.constant 0 : index
    %c0_2 = arith.constant 0 : index
    %c0_3 = arith.constant 0 : index
    %1 = vector.load %arg3[%c0_1, %c0_2, %c0_3] : memref<1x4x16xf32, #tpu.memory_space<vmem>>, vector<1x4x16xf32>
    %2 = vector.shape_cast %1 : vector<1x4x16xf32> to vector<4x16xf32>
    %cst = arith.constant dense<0.000000e+00> : vector<4x16xf32>
    %3 = tpu.matmul %0, %2, %cst {dimension_numbers = #tpu.dot_dimension_numbers<[1], [0], [0], [1], [0, 0, 1, 1], [], []>} : vector<4x4xf32>, vector<4x16xf32>, vector<4x16xf32> -> vector<4x16xf32>
    %c0_4 = arith.constant 0 : index
    %c0_5 = arith.constant 0 : index
    %c0_6 = arith.constant 0 : index
    %4 = vector.load %arg4[%c0_4, %c0_5, %c0_6] : memref<1x4x16xf32, #tpu.memory_space<vmem>>, vector<1x4x16xf32>
    %5 = vector.shape_cast %4 : vector<1x4x16xf32> to vector<4x16xf32>
    %6 = vector.shape_cast %3 : vector<4x16xf32> to vector<1x4x16xf32>
    tpu.vector_store %arg4[%c0_4, %c0_5, %c0_6], %6 {strides = array<i32>} : memref<1x4x16xf32, #tpu.memory_space<vmem>>, vector<1x4x16xf32>,
    return
  }
  func.func @transform_0(%arg0: i32, %arg1: i32) -> (i32, i32) {
    %c0_i32 = arith.constant 0 : i32
    %c0_i32_0 = arith.constant 0 : i32
    %c0_i32_1 = arith.constant 0 : i32
    return %c0_i32, %c0_i32_0 : i32, i32
  }
  func.func @transform_1(%arg0: i32, %arg1: i32) -> (i32, i32, i32) {
    %c0_i32 = arith.constant 0 : i32
    %c0_i32_0 = arith.constant 0 : i32
    return %arg0, %c0_i32, %arg1 : i32, i32, i32
  }
  func.func @transform_2(%arg0: i32, %arg1: i32) -> (i32, i32, i32) {
    %c0_i32 = arith.constant 0 : i32
    %c0_i32_0 = arith.constant 0 : i32
    return %arg0, %c0_i32, %arg1 : i32, i32, i32
  }
}

</mosaic_0001>

<bundles_post_ra>
// kernel: tpu_custom_call.1
= control target key start
LH: loop header
LB: loop body
LE: loop exit
PB: predicated region body
PF: predicated region fallthrough
CT: control target
= control target key end

     0   :  { %7 = vsyncpa [#allocation3], 0  ;;  %s859_s0 = inlined_call_operand.hbm [shape: f32[4,4], index: 0, kind: input, shape index: {}]   ;;  %s860_s1 = inlined_call_operand.hbm [shape: f32[2,4,16], index: 1, kind: input, shape index: {}]   ;;  %s861_s2 = inlined_call_operand.hbm [shape: f32[2,4,16], index: 2, kind: output, shape index: {}]  }
   0x1   :  { %8 = vsyncpa [#allocation6], 0 }
   0x2   :  { %10 = vsyncpa [#allocation6 + $0x1], 0 }
   0x3   :  { %11 = vsyncpa [#allocation4], 0 }
   0x4   :  { %13 = vsyncpa [#allocation4 + $0x1], 0  ;;  %s643_s9 = smov 0   ;;  %s645_s10 = smov 0  }
   0x5   :  { %s647_s11 = smov 0   ;;  %s649_s12 = smov 0  }
   0x6   :  { %s651_s13 = smov 0   ;;  %s653_s14 = smov 0  }
   0x7 LB: > { %s378_s15 = sadd.s32 4294967295, %s621_s14   ;;  %s379_s16 = sadd.s32 4294967294, %s621_s14   ;;  %s621_s14 = sphi %s653_s14, %s19_s14   ;;  %s617_s13 = sphi %s651_s13, %s886_s13   ;;  %s613_s12 = sphi %s649_s12, %s885_s12   ;;  %s609_s11 = sphi %s647_s11, %s884_s11   ;;  %s605_s10 = sphi %s645_s10, %s883_s10   ;;  %s601_s9 = sphi %s643_s9, %s882_s9  }
   0x8   : > { %p74_p0 = scmp.ne.s32.totalorder %s605_s10, %s601_s9  ;;  %p677_p1 = scmp.eq.s32.totalorder %s378_s15, 0 }
   0x9   : > { %p681_p2 = scmp.eq.s32.totalorder %s378_s15, 1  ;;  %p106_p3 = scmp.eq.s32.totalorder %s379_s16, 1 }
   0xa   : > { %s866_s17 = scalar_select %p677_p1, 1, 0 }
   0xb   : > { %s867_s18 = scalar_select %p681_p2, 1, 0 }
   0xc   : > { %p687_p4 = por %p677_p1, %p74_p0  ;;  %p380_p5 = scmp.ge.s32.totalorder %s621_s14, 1 }
   0xd   : > { %p692_p6 = por %p106_p3, %p74_p0  ;;  %p113_p7 = scmp.lt.s32.totalorder %s621_s14, 3 }
   0xe   : > { %s868_s19 = scalar_select %p687_p4, 1, 0 }
   0xf   : > { %s869_s20 = scalar_select %p692_p6, 1, 0 }
  0x10   : > { %p697_p8 = pnand %p380_p5, %p113_p7  ;;  %s623_s22 = smov [#allocation2]  }
  0x11   : > { %s126_s23 = sshll.u32 %s623_s22, 4  ;;  %s31_s25 = sadd.s32 1, %s617_s13  ;;  %s127_s23 = int_to_ptr.vmem [resolvable:$true] %s126_s23 }
  0x12   : > { %s870_s21 = scalar_select %p697_p8, 1, 0 }
  0x13   : > { %p410_p10 = pneg %p697_p8  ;;  %s61_s26 = sadd.s32 1, %s609_s11 }
  0x14   : > { %p712_p12 = scmp.ge.s32.totalorder %s31_s25, 2  ;;  %s477_s30 = scalar_lea.hbm %s859_s0, 64 }
  0x15   : > { %p706_p11 = pnand %p410_p10, %p677_p1  ;;  %p478_p13 = scmp.ne.s32.totalorder %s859_s0, %s477_s30 }
  0x16   : > { %s872_s27 = scalar_select %p712_p12, 1, 0 }
  0x17   : > { %p479_p0 = pneg %p706_p11  ;;  %p484_p7 = scmp.lt.u32.totalorder %s477_s30, %s859_s0 }
  0x19   : > { %p480_p3 = pnand %p479_p0, %p478_p13 }
  0x1b   : > { %p481_p5 = pneg %p480_p3 }
  0x1d   : > { %p486_p10 = pnand %p484_p7, %p481_p5 }
  0x1f   : > { %489 = shalt.err (!%p486_p10)
}
  0x20   : > { %s490_s7 = scalar_lea.vmem %s127_s23, 64  ;;  %p498_p1 = scmp.lt.s32.totalorder %s127_s23, %s127_s23 }
  0x21   : > { %p491_p9 = scmp.ne.s32.totalorder %s127_s23, %s490_s7  ;;  %p499_p8 = scmp.lt.s32.totalorder %s490_s7, %s490_s7 }
  0x23   : > { %p493_p6 = pnand %p491_p9, %p479_p0  ;;  %p500_p2 = por %p499_p8, %p498_p1 }
  0x25   : > { %p494_p4 = pneg %p493_p6 }
  0x27   : > { %p501_p12 = pnand %p500_p2, %p494_p4 }
  0x29   : > { %504 = shalt.err (!%p501_p12)
}
  0x2a   : > { %413 = dma.hbm_to_vmem [thread:$0]  (!%p706_p11), %s859_s0, 64, %s127_s23, [#allocation3]  }
  0x2b   : > { %p873_p1 = scmp.ne.s32.totalorder %s872_s27, 0  ;;  %p68_p2 = scmp.ne.s32.totalorder %s609_s11, %s605_s10 }
  0x2c   : > { %p69_p4 = scmp.eq.s32.totalorder %s621_s14, 0  ;;  %p423_p6 = scmp.lt.s32.totalorder %s621_s14, 2 }
  0x2d   : > { %s888_s25 = smov (%p873_p1, %s31_s25), 0  ;;  %p874_p12 = scmp.ne.s32.totalorder %s867_s18, 0 }
  0x2e   : > { %s56_s16 = ssub.s32 %s617_s13, %s888_s25  ;;  %p70_p9 = por %p69_p4, %p68_p2 }
  0x2f   : > { %p59_p8 = scmp.eq.s32.totalorder %s56_s16, 0  ;;  %p744_p13 = por %p874_p12, %p68_p2 }
  0x30   : > { %s137_s24 = sand.u32 1, %s609_s11   ;;  %s384_s27 = sshll.u32 %s617_s13, 6 }
  0x31   : > { %s752_s28 = scalar_select %p59_p8, %s609_s11, %s61_s26  }
  0x32   : > { %s383_s23 = sshll.u32 %s137_s24, 2  ;;  %s758_s3 = scalar_lea.hbm %s860_s1, %s384_s27 }
  0x33   : > { %s141_s18 = scalar_lea.vmem [#allocation5], %s383_s23  ;;  %p762_p11 = pnand %p423_p6, %p70_p9 }
  0x34   : > { %s149_s4 = sshll.u32 %s141_s18, 4  ;;  %s138_s26 = scalar_lea.sflag [#allocation6], %s137_s24  ;;  %s760_s4 = int_to_ptr.vmem [resolvable:$true] %s149_s4 }
  0x35   : > { %s505_s6 = scalar_lea.hbm %s758_s3, 64  ;;  %p507_p3 = pneg %p762_p11 }
  0x36   : > { %p506_p0 = scmp.ne.s32.totalorder %s758_s3, %s505_s6  ;;  %s510_s15 = scalar_lea.hbm %s860_s1, 128 }
  0x37   : > { %p511_p10 = scmp.lt.u32.totalorder %s758_s3, %s860_s1  ;;  %p512_p1 = scmp.lt.u32.totalorder %s510_s15, %s505_s6 }
  0x38   : > { %p508_p5 = pnand %p507_p3, %p506_p0  ;;  %p514_p4 = scmp.lt.u32.totalorder %s505_s6, %s758_s3 }
  0x39   : > { %p513_p2 = por %p512_p1, %p511_p10 }
  0x3a   : > { %p509_p7 = pneg %p508_p5 }
  0x3b   : > { %p515_p6 = por %p514_p4, %p513_p2 }
  0x3d   : > { %p516_p8 = pnand %p515_p6, %p509_p7 }
  0x3f   : > { %519 = shalt.err (!%p516_p8)
}
  0x40   : > { %s520_s24 = scalar_lea.vmem %s760_s4, 64  ;;  %s624_s27 = smov [#allocation5]  }
  0x41   : > { %p521_p9 = scmp.ne.s32.totalorder %s760_s4, %s520_s24  ;;  %s525_s29 = sshll.u32 %s624_s27, 4  ;;  %s526_s29 = int_to_ptr.vmem [resolvable:$false] %s525_s29 }
  0x42   : > { %s527_s30 = scalar_lea.vmem %s526_s29, 128  ;;  %p528_p5 = scmp.lt.s32.totalorder %s760_s4, %s526_s29 }
  0x43   : > { %p523_p12 = pnand %p521_p9, %p507_p3  ;;  %p529_p10 = scmp.lt.s32.totalorder %s527_s30, %s520_s24 }
  0x45   : > { %p524_p0 = pneg %p523_p12  ;;  %p530_p1 = por %p529_p10, %p528_p5 }
  0x47   : > { %p531_p2 = pnand %p530_p1, %p524_p0 }
  0x49   : > { %534 = shalt.err (!%p531_p2)
}
  0x4a   : > { %417 = dma.hbm_to_vmem [thread:$0]  (!%p762_p11), %s758_s3, 64, %s760_s4, %s138_s26  }
  0x4b   : > { %p877_p7 = scmp.ne.s32.totalorder %s870_s21, 0 }
  0x4c   : > { %p878_p3 = scmp.ne.s32.totalorder (!%p877_p7), %s866_s17, 0 }
  0x4d   : > { %158 = sbr.rel (%p877_p7) target bundleno = 318 (0x13e), region = 28 }
  0x54   : > { %588 = dma.done.wait (%p878_p3), [#allocation3], 64  }
  0x55   : > { %590 = vsyncadd (%p878_p3), [#allocation3], 4294967232  ;;  %s798_s18 = sand.u32 1, %s605_s10   ;;  %p879_p4 = scmp.ne.s32.totalorder %s868_s19, 0 }
  0x56   : > { %s387_s6 = sshll.u32 %s798_s18, 2  ;;  %s165_s5 = scalar_lea.sflag [#allocation6], %s798_s18 }
  0x57   : > { %s168_s7 = scalar_lea.vmem [#allocation5], %s387_s6 }
  0x58   : > { %592 = dma.done.wait (%p879_p4), %s165_s5, 64  }
  0x59   : > { %594 = vsyncadd (%p879_p4), %s165_s5, 4294967232  ;;  %v625_v0 = vmov 0.0   ;;  %vm626_vm0 = vmmov 0   ;;  %vm195_vm1 = vcmask 1043456   ;;  %vm191_vm2 = vcmask 31744   ;;  %s392_s17 = sshll.u32 %s613_s12, 6 }
  0x5a   : > { %397 = vmatprep.subr.mxu0 %v625_v0  ;;  %399 = vmatprep.mubr.msk.f32.mxu0 %vm626_vm0, %v625_v0  ;;  %v190_v1 = vld [vmem:[%s168_s7] sm:$0xf]  ;;  %v189_v2 = vld [vmem:[#allocation2] sm:$0xf]  ;;  %s188_s21 = scalar_lea.vmem [#allocation7], %s387_s6  ;;  %vm269_vm3 = vcmask 125952   ;;  %s810_s26 = scalar_lea.hbm %s861_s2, %s392_s17 }
  0x5b   : > { %398 = vmatpush3.msk.msra.mxu0 %vm195_vm1, %v190_v1  ;;  %s286_s3 = sshll.u32 %s188_s21, 4  ;;  %s272_s8 = scalar_lea.sflag [#allocation4], %s798_s18  ;;  %s812_s3 = int_to_ptr.vmem [resolvable:$true] %s286_s3 }
  0x5c   : > { %400 = vmatmul.mubr.msk.f32.vlgmr.msra.gmra.mrb[0].mxu0 %vm191_vm2, %v189_v2  ;;  %s535_s15 = scalar_lea.vmem %s812_s3, 64  ;;  %s627_s12 = smov [#allocation7]  }
  0x5d   : > { %p536_p11 = scmp.ne.s32.totalorder %s812_s3, %s535_s15  ;;  %s539_s16 = sshll.u32 %s627_s12, 4  ;;  %s540_s16 = int_to_ptr.vmem [resolvable:$false] %s539_s16 }
  0x5e   : > { %s541_s23 = scalar_lea.vmem %s540_s16, 128  ;;  %p542_p9 = scmp.lt.s32.totalorder %s812_s3, %s540_s16 }
  0x5f   : > { %p537_p6 = pnand %p536_p11, %p744_p13  ;;  %p543_p12 = scmp.lt.s32.totalorder %s541_s23, %s535_s15 }
  0x61   : > { %p538_p8 = pneg %p537_p6  ;;  %p544_p0 = por %p543_p12, %p542_p9 }
  0x63   : > { %p545_p5 = pnand %p544_p0, %p538_p8 }
 0x12f   : > { %v265_v3 = vpop.f32.mrb[0].mxu0 }
 0x130   : > { %270 = vst.msk [vmem:[%s188_s21] sm:$0xf] %vm269_vm3, %v265_v3  ;;  %v401_v4 = vpop.f32.mrb[1].mxu0 }
 0x131   : > { %548 = shalt.err (!%p545_p5)
}
 0x132   : > { %s549_s24 = scalar_lea.hbm %s810_s26, 64  ;;  %s553_s30 = scalar_lea.hbm %s861_s2, 128 }
 0x133   : > { %p550_p10 = scmp.ne.s32.totalorder %s810_s26, %s549_s24  ;;  %p554_p7 = scmp.lt.u32.totalorder %s810_s26, %s861_s2 }
 0x134   : > { %p555_p3 = scmp.lt.u32.totalorder %s553_s30, %s549_s24  ;;  %p557_p11 = scmp.lt.u32.totalorder %s549_s24, %s810_s26 }
 0x135   : > { %p551_p1 = pnand %p550_p10, %p744_p13 }
 0x136   : > { %p556_p4 = por %p555_p3, %p554_p7 }
 0x137   : > { %p552_p2 = pneg %p551_p1 }
 0x138   : > { %p558_p6 = por %p557_p11, %p556_p4 }
 0x13a   : > { %p559_p8 = pnand %p558_p6, %p552_p2 }
 0x13c   : > { %562 = shalt.err (!%p559_p8)
}
 0x13d   : > { %408 = dma.vmem_to_hbm [thread:$0]  (%p744_p13), %s812_s3, 64, %s810_s26, %s272_s8  }
 0x13e PF: > { %s298_s5 = sand.u32 1, %s601_s9   ;;  %p880_p9 = scmp.ne.s32.totalorder %s869_s20, 0 }
 0x13f   : > { %p881_p12 = scmp.ge.s32.totalorder %s621_s14, 2  ;;  %s299_s7 = scalar_lea.sflag [#allocation4], %s298_s5 }
 0x141   : > { %p419_p0 = pnand %p881_p12, %p880_p9 }
 0x143   : > { %596 = dma.done.wait (!%p419_p0), %s299_s7, 64  }
 0x144   : > { %598 = vsyncadd (!%p419_p0), %s299_s7, 4294967232  ;;  %s19_s14 = sadd.s32 1, %s621_s14   ;;  %s882_s9 = smov %s605_s10 }
 0x145   : > { %p16_p5 = scmp.ge.s32.totalorder %s19_s14, 4   ;;  %s883_s10 = smov %s609_s11 }
 0x146   : > { %s884_s11 = smov %s752_s28  ;;  %s885_s12 = smov %s617_s13 }
 0x147   : > { %s886_s13 = smov %s888_s25  ;;  %18 = sbr.rel (!%p16_p5) target bundleno = 7 (0x7), region = 78 }
 0x14e   :  { %304 = vsyncpa [#allocation3], 1 }
 0x14f   :  { %306 = vsyncpa [#allocation3 + $0x1], 1 }
 0x150   :  { %307 = vsyncpa [#allocation6], 1 }
 0x151   :  { %309 = vsyncpa [#allocation6 + $0x1], 1 }
 0x152   :  { %310 = vsyncpa [#allocation4], 1 }
 0x153   :  { %312 = vsyncpa [#allocation4 + $0x1], 1 }

</bundles_post_ra>
